<compile_context>
chip_gen: v7x
topology: tpu7x:2x2x1
jax: 0.10.0
libtpu: 0.0.40
codegen_flags: <defaults>
</compile_context>

<pallas_src>
import jax
import jax.numpy as jnp
from jax.experimental import pallas as pl
from jax.experimental.pallas import tpu as pltpu


def maxpool2x2_kernel(p00_ref, p01_ref, p10_ref, p11_ref, o_ref):
    """Elementwise max of the four 2x2-window corner planes.

    All refs have block shape (TB, Hh*Wh): full-block loads / store only.
    """
    o_ref[...] = jnp.maximum(
        jnp.maximum(p00_ref[...], p01_ref[...]),
        jnp.maximum(p10_ref[...], p11_ref[...]),
    )


def _pick_block_rows(nc: int, l: int, itemsize: int) -> int:
    """Rows of the flattened (NC, L) planes processed per grid step.

    The pipeline holds ~10 VMEM buffers of (TB, L) (4 inputs + 1 output,
    double-buffered), so target ~1 MiB per buffer.  Prefer TB that divides NC
    and is a multiple of 8 (or == NC) to keep blocks sublane-aligned, and keep
    >= 2 grid steps when NC is large so a 2-TC chip (v7x) shards the grid.
    """
    target_block_bytes = 1 << 20  # ~1 MiB per buffer
    cap = max(1, target_block_bytes // max(1, l * itemsize))
    cap = min(cap, nc)
    if nc >= 16:
        cap = min(cap, nc // 2)  # leave >= 2 grid steps for megacore sharding

    best = None
    for tb in range(1, cap + 1):
        if nc % tb == 0 and (tb % 8 == 0 or tb == nc):
            best = tb
    if best is None:
        for tb in range(1, cap + 1):
            if nc % tb == 0:
                best = tb
    return best


@jax.jit
def downsample(x: jax.Array) -> jax.Array:
    """Equivalent of nn.MaxPool2d(2) on an NCHW tensor."""
    N, C, H, W = x.shape
    # TODO(synk): odd spatial dims (PyTorch floors) are not supported here.
    assert H % 2 == 0 and W % 2 == 0, "MaxPool2d(2) kernel expects even H, W"
    Hh, Wh = H // 2, W // 2
    NC, L = N * C, Hh * Wh

    xf = x.reshape(NC, H, W)  # free reshape (contiguous)
    # Four 2x2-window corner planes, each flattened to a lane-dense (NC, L)
    # slab.  With allow_input_fusion these strided slices fuse into the
    # kernel's input DMAs instead of being materialized in HBM.
    p00 = xf[:, 0::2, 0::2].reshape(NC, L)   # x[2i,   2j]
    p01 = xf[:, 0::2, 1::2].reshape(NC, L)   # x[2i,   2j+1]
    p10 = xf[:, 1::2, 0::2].reshape(NC, L)   # x[2i+1, 2j]
    p11 = xf[:, 1::2, 1::2].reshape(NC, L)   # x[2i+1, 2j+1]

    tb = _pick_block_rows(NC, L, x.dtype.itemsize)
    spec = pl.BlockSpec((tb, L), lambda i: (i, 0))

    out = pl.pallas_call(
        maxpool2x2_kernel,
        out_shape=jax.ShapeDtypeStruct((NC, L), x.dtype),
        grid=(NC // tb,),
        in_specs=[spec, spec, spec, spec],
        out_specs=spec,
        compiler_params=pltpu.CompilerParams(
            dimension_semantics=("parallel",),
            vmem_limit_bytes=32 * 1024 * 1024,
            allow_input_fusion=[True, True, True, True],
        ),
        cost_estimate=pl.CostEstimate(
            flops=3 * NC * L,                                   # 3 max ops / output elem
            transcendentals=0,
            bytes_accessed=int(1.25 * x.size * x.dtype.itemsize),
        ),
    )(p00, p01, p10, p11)

    return out.reshape(N, C, Hh, Wh)


if __name__ == "__main__":
    key = jax.random.PRNGKey(0)
    # Small NCHW input consistent with a U-Net feature map.
    x = jax.random.normal(key, (2, 4, 16, 16), dtype=jnp.float32)

    y = jax.block_until_ready(downsample(x))

    # Pure-JAX reference of MaxPool2d(2) for a correctness check.
    N, C, H, W = x.shape
    ref = x.reshape(N, C, H // 2, 2, W // 2, 2).max(axis=(3, 5))

    assert y.shape == (N, C, H // 2, W // 2), y.shape
    assert jnp.allclose(y, ref), "Pallas maxpool does not match reference"

    print("KERNEL_OK")
</pallas_src>

<mosaic_0001>
module attributes {stable_mosaic.version = 11 : i64} {
  func.func @maxpool2x2_kernel(%arg0: i32, %arg1: memref<8x64xf32, #tpu.memory_space<vmem>>, %arg2: memref<8x64xf32, #tpu.memory_space<vmem>>, %arg3: memref<8x64xf32, #tpu.memory_space<vmem>>, %arg4: memref<8x64xf32, #tpu.memory_space<vmem>>, %arg5: memref<8x64xf32, #tpu.memory_space<vmem>>) attributes {dimension_semantics = [#tpu.dimension_semantics<parallel>], iteration_bounds = array<i64: 1>, scalar_prefetch = 0 : i64, scratch_operands = 0 : i64, tpu.core_type = #tpu.core_type<tc>, window_params = [{transform_indices = @transform_0, window_bounds = array<i64: 8, 64>}, {transform_indices = @transform_1, window_bounds = array<i64: 8, 64>}, {transform_indices = @transform_2, window_bounds = array<i64: 8, 64>}, {transform_indices = @transform_3, window_bounds = array<i64: 8, 64>}, {transform_indices = @transform_4, window_bounds = array<i64: 8, 64>}]} {
    %c0 = arith.constant 0 : index
    %c0_0 = arith.constant 0 : index
    %0 = vector.load %arg1[%c0, %c0_0] : memref<8x64xf32, #tpu.memory_space<vmem>>, vector<8x64xf32>
    %c0_1 = arith.constant 0 : index
    %c0_2 = arith.constant 0 : index
    %1 = vector.load %arg2[%c0_1, %c0_2] : memref<8x64xf32, #tpu.memory_space<vmem>>, vector<8x64xf32>
    %2 = arith.maximumf %0, %1 : vector<8x64xf32>
    %c0_3 = arith.constant 0 : index
    %c0_4 = arith.constant 0 : index
    %3 = vector.load %arg3[%c0_3, %c0_4] : memref<8x64xf32, #tpu.memory_space<vmem>>, vector<8x64xf32>
    %c0_5 = arith.constant 0 : index
    %c0_6 = arith.constant 0 : index
    %4 = vector.load %arg4[%c0_5, %c0_6] : memref<8x64xf32, #tpu.memory_space<vmem>>, vector<8x64xf32>
    %5 = arith.maximumf %3, %4 : vector<8x64xf32>
    %6 = arith.maximumf %2, %5 : vector<8x64xf32>
    %c0_7 = arith.constant 0 : index
    %c0_8 = arith.constant 0 : index
    %7 = vector.load %arg5[%c0_7, %c0_8] : memref<8x64xf32, #tpu.memory_space<vmem>>, vector<8x64xf32>
    tpu.vector_store %arg5[%c0_7, %c0_8], %6 {strides = array<i32>} : memref<8x64xf32, #tpu.memory_space<vmem>>, vector<8x64xf32>,
    return
  }
  func.func @transform_0(%arg0: i32) -> (i32, i32) {
    %c0_i32 = arith.constant 0 : i32
    %c0_i32_0 = arith.constant 0 : i32
    return %arg0, %c0_i32 : i32, i32
  }
  func.func @transform_1(%arg0: i32) -> (i32, i32) {
    %c0_i32 = arith.constant 0 : i32
    %c0_i32_0 = arith.constant 0 : i32
    return %arg0, %c0_i32 : i32, i32
  }
  func.func @transform_2(%arg0: i32) -> (i32, i32) {
    %c0_i32 = arith.constant 0 : i32
    %c0_i32_0 = arith.constant 0 : i32
    return %arg0, %c0_i32 : i32, i32
  }
  func.func @transform_3(%arg0: i32) -> (i32, i32) {
    %c0_i32 = arith.constant 0 : i32
    %c0_i32_0 = arith.constant 0 : i32
    return %arg0, %c0_i32 : i32, i32
  }
  func.func @transform_4(%arg0: i32) -> (i32, i32) {
    %c0_i32 = arith.constant 0 : i32
    %c0_i32_0 = arith.constant 0 : i32
    return %arg0, %c0_i32 : i32, i32
  }
}

</mosaic_0001>

<bundles_post_ra>
// kernel: downsample.1
= control target key start
LH: loop header
LB: loop body
LE: loop exit
PB: predicated region body
PF: predicated region fallthrough
CT: control target
= control target key end

     0   :  { %vm24_vm0 = vcmask 523264   ;;  %s70_s0 = inlined_call_operand.vmem [shape: f32[8,64], index: 0, kind: input, shape index: {}]   ;;  %s71_s1 = inlined_call_operand.vmem [shape: f32[8,64], index: 1, kind: input, shape index: {}]   ;;  %s72_s2 = inlined_call_operand.vmem [shape: f32[8,64], index: 2, kind: input, shape index: {}]   ;;  %s73_s3 = inlined_call_operand.vmem [shape: f32[8,64], index: 3, kind: input, shape index: {}]   ;;  %s74_s4 = inlined_call_operand.vmem [shape: f32[8,64], index: 4, kind: output, shape index: {}]  }
   0x1   :  { %v17_v0 = vld [vmem:[%s70_s0] sm:$0xff] }
   0x2   :  { %v18_v1 = vld [vmem:[%s71_s1] sm:$0xff] }
   0x3   :  { %v20_v2 = vld [vmem:[%s72_s2] sm:$0xff]  ;;  %v19_v3 = vmax.f32 %v17_v0, %v18_v1 }
   0x4   :  { %v21_v4 = vld [vmem:[%s73_s3] sm:$0xff] }
   0x5   :  { %v22_v5 = vmax.f32 %v20_v2, %v21_v4 }
   0x7   :  { %v23_v6 = vmax.f32 %v19_v3, %v22_v5 }
   0x9   :  { %25 = vst.msk [vmem:[%s74_s4] sm:$0xff] %vm24_vm0, %v23_v6 }

</bundles_post_ra>
